<compile_context>
chip_gen: v7x
topology: tpu7x:2x2x1
jax: 0.10.0
libtpu: 0.0.40
codegen_flags: <defaults>
</compile_context>

<pallas_src>
import functools

import jax
import jax.numpy as jnp
from jax.experimental import pallas as pl
from jax.experimental.pallas import tpu as pltpu


def _basic_block_kernel(x_ref, wb1_ref, wb2_ref, bias_ref, out_ref,
                        xpad_ref, hpad_ref, *, Bt, H):
    """One grid step processes Bt full images.

    x_ref    : (Bt, H, WC)     f32 images, channels folded into the lane dim
    wb1_ref  : (3, WC, WC)     bf16 banded conv1 weights (bn1 scale folded in)
    wb2_ref  : (3, WC, WC)     bf16 banded conv2 weights (bn2 scale folded in)
    bias_ref : (2, WC)         f32 folded BN biases (row 0 = bn1, row 1 = bn2)
    out_ref  : (Bt, H, WC)
    xpad_ref, hpad_ref : (Bt*(H+2), WC) f32 scratch, per-image zero halo rows
    """
    Hp = H + 2
    L = Bt * Hp
    WC = x_ref.shape[2]
    zrow = jnp.zeros((1, WC), xpad_ref.dtype)

    # Stage x into the per-image zero-halo layout [0, x_b rows, 0] per image.
    # Only the 2*Bt halo rows are zeroed (not the full buffer); done every step
    # so correctness does not depend on scratch persistence per TensorCore.
    for b in range(Bt):
        r = b * Hp
        xpad_ref[r:r + 1, :] = zrow
        xpad_ref[r + 1:r + 1 + H, :] = x_ref[b].astype(xpad_ref.dtype)
        xpad_ref[r + H + 1:r + H + 2, :] = zrow

    def conv3x3(pad_ref, wb_ref):
        # 3x3 SAME conv over the whole Bt-image slab: 3 matmuls with M = L-2.
        # kx taps + W-boundary zeros are baked into the banded weights.
        # Operands go to the MXU as bf16; accumulate in f32.
        acc = jnp.dot(pad_ref[0:L - 2, :].astype(jnp.bfloat16), wb_ref[0],
                      preferred_element_type=jnp.float32)
        acc = acc + jnp.dot(pad_ref[1:L - 1, :].astype(jnp.bfloat16), wb_ref[1],
                            preferred_element_type=jnp.float32)
        acc = acc + jnp.dot(pad_ref[2:L, :].astype(jnp.bfloat16), wb_ref[2],
                            preferred_element_type=jnp.float32)
        return acc

    # conv1 + bn1 (scale folded into wb1) + relu.  Rows at image boundaries are
    # garbage; they are overwritten with zeros below so they act as halos.
    h1 = jnp.maximum(conv3x3(xpad_ref, wb1_ref) + bias_ref[0:1, :], 0.0)

    hpad_ref[1:L - 1, :] = h1.astype(hpad_ref.dtype)
    hpad_ref[0:1, :] = zrow
    hpad_ref[L - 1:L, :] = zrow
    for b in range(Bt - 1):            # re-zero the 2 halo rows between images
        r = b * Hp + H + 1
        hpad_ref[r:r + 2, :] = jnp.zeros((2, WC), hpad_ref.dtype)

    # conv2 + bn2 bias, then per-image residual add + relu (lane-dense stores).
    acc2 = conv3x3(hpad_ref, wb2_ref) + bias_ref[1:2, :]
    for b in range(Bt):
        r = b * Hp
        o = acc2[r:r + H, :] + x_ref[b].astype(jnp.float32)
        out_ref[b] = jnp.maximum(o, 0.0).astype(out_ref.dtype)


def _band_weights(w_hwio, W):
    """Fold a 3x3 HWIO conv weight into 3 banded (W*Cin, W*Cout) matrices.

    band[ky][v*Cin + ci, w*Cout + co] = w_hwio[ky, kx, ci, co]  iff v == w+kx-1.
    Taps falling outside 0..W-1 are dropped -> SAME zero padding along W is
    baked into the weight matrix.
    """
    kh, kw, cin, cout = w_hwio.shape
    assert kh == 3 and kw == 3, "banded construction assumes a 3x3 kernel"
    v = jnp.arange(W)[None, None, :]
    w = jnp.arange(W)[:, None, None]
    kx = jnp.arange(kw)[None, :, None]
    onehot = (v == w + kx - (kw // 2)).astype(w_hwio.dtype)        # (W, kw, W)
    bands = jnp.einsum("wkv,ykio->yviwo", onehot, w_hwio)          # (kh,W,Ci,W,Co)
    return bands.reshape(kh, W * cin, W * cout)


def _fold_bn(gamma, beta, mean, var, eps=1e-5):
    scale = gamma * jax.lax.rsqrt(var + eps)
    return scale, beta - mean * scale


def basic_block_forward(x_nchw, p, *, target_m_rows=256):
    """BasicBlock forward (stride=1, downsample=None). NCHW in / NCHW out."""
    N, C, H, W = x_nchw.shape
    Cout = p["w1"].shape[-1]
    assert C == Cout, "stride=1 / downsample=None requires inplanes == planes"
    WC = W * C
    Hp = H + 2

    # Images per grid step: fatten the MXU M dimension (Bt*H rows) and amortize
    # per-step/DMA overhead; Bt must divide N.
    Bt = min(N, max(1, -(-target_m_rows // H)))
    while N % Bt:
        Bt -= 1
    grid = (N // Bt,)

    # NCHW -> NHWC -> (N, H, W*C): channels folded into the lane dimension.
    x = jnp.transpose(x_nchw, (0, 2, 3, 1)).reshape(N, H, WC)

    s1, b1 = _fold_bn(p["bn1_gamma"], p["bn1_beta"], p["bn1_mean"], p["bn1_var"])
    s2, b2 = _fold_bn(p["bn2_gamma"], p["bn2_beta"], p["bn2_mean"], p["bn2_var"])
    tile = lambda v: jnp.tile(v.astype(jnp.float32), W)            # (W*Cout,)

    # Fold the BN scales into the banded weights' output columns; cast to bf16
    # (halves weight DMA + VMEM and enables the native bf16 MXU path).
    wb1 = (_band_weights(p["w1"].astype(jnp.float32), W)
           * tile(s1)[None, None, :]).astype(jnp.bfloat16)
    wb2 = (_band_weights(p["w2"].astype(jnp.float32), W)
           * tile(s2)[None, None, :]).astype(jnp.bfloat16)
    bias = jnp.stack([tile(b1), tile(b2)], axis=0)                 # (2, WC) f32

    kernel = functools.partial(_basic_block_kernel, Bt=Bt, H=H)
    out = pl.pallas_call(
        kernel,
        out_shape=jax.ShapeDtypeStruct((N, H, WC), x.dtype),
        grid=grid,
        in_specs=[
            pl.BlockSpec((Bt, H, WC), lambda n: (n, 0, 0)),            # x
            pl.BlockSpec(memory_space=pltpu.MemorySpace.VMEM),         # wb1
            pl.BlockSpec(memory_space=pltpu.MemorySpace.VMEM),         # wb2
            pl.BlockSpec(memory_space=pltpu.MemorySpace.VMEM),         # biases
        ],
        out_specs=pl.BlockSpec((Bt, H, WC), lambda n: (n, 0, 0)),
        scratch_shapes=[
            pltpu.VMEM((Bt * Hp, WC), jnp.float32),   # padded x slab
            pltpu.VMEM((Bt * Hp, WC), jnp.float32),   # padded conv1-output slab
        ],
        compiler_params=pltpu.CompilerParams(
            dimension_semantics=("parallel",)),       # batch axis -> both TCs
    )(x, wb1, wb2, bias)

    return jnp.transpose(out.reshape(N, H, W, Cout), (0, 3, 1, 2))


def reference_forward(x_nchw, p):
    """Pure-JAX f32 reference (XLA convs) for correctness checking."""
    x = jnp.transpose(x_nchw, (0, 2, 3, 1))

    def conv(h, w):
        return jax.lax.conv_general_dilated(
            h, w, (1, 1), "SAME",
            dimension_numbers=("NHWC", "HWIO", "NHWC"))

    def bn(h, g, b, m, v):
        return (h - m) * jax.lax.rsqrt(v + 1e-5) * g + b

    h = jax.nn.relu(bn(conv(x, p["w1"]), p["bn1_gamma"], p["bn1_beta"],
                       p["bn1_mean"], p["bn1_var"]))
    h = bn(conv(h, p["w2"]), p["bn2_gamma"], p["bn2_beta"],
           p["bn2_mean"], p["bn2_var"]) + x
    h = jax.nn.relu(h)
    return jnp.transpose(h, (0, 3, 1, 2))


if __name__ == "__main__":
    N, C, H, W = 2, 8, 16, 16            # inplanes = planes = 8 ; W*C = 128 lanes
    key = jax.random.PRNGKey(0)
    ks = jax.random.split(key, 11)
    params = {
        "w1": jax.random.normal(ks[0], (3, 3, C, C), jnp.float32) / jnp.sqrt(9.0 * C),
        "w2": jax.random.normal(ks[1], (3, 3, C, C), jnp.float32) / jnp.sqrt(9.0 * C),
        "bn1_gamma": 1.0 + 0.1 * jax.random.normal(ks[2], (C,), jnp.float32),
        "bn1_beta": 0.1 * jax.random.normal(ks[3], (C,), jnp.float32),
        "bn1_mean": 0.1 * jax.random.normal(ks[4], (C,), jnp.float32),
        "bn1_var": 1.0 + 0.1 * jnp.abs(jax.random.normal(ks[5], (C,), jnp.float32)),
        "bn2_gamma": 1.0 + 0.1 * jax.random.normal(ks[6], (C,), jnp.float32),
        "bn2_beta": 0.1 * jax.random.normal(ks[7], (C,), jnp.float32),
        "bn2_mean": 0.1 * jax.random.normal(ks[8], (C,), jnp.float32),
        "bn2_var": 1.0 + 0.1 * jnp.abs(jax.random.normal(ks[9], (C,), jnp.float32)),
    }
    x = jax.random.normal(ks[10], (N, C, H, W), jnp.float32)

    fwd = jax.jit(basic_block_forward)
    out = jax.block_until_ready(fwd(x, params))
    ref = jax.block_until_ready(reference_forward(x, params))

    assert out.shape == (N, C, H, W), out.shape
    max_err = float(jnp.max(jnp.abs(out - ref)))
    # bf16 MXU operands vs an all-f32 XLA reference -> loosened tolerance.
    assert jnp.allclose(out, ref, atol=5e-2, rtol=5e-2), max_err
    print("KERNEL_OK")
</pallas_src>

<mosaic_0001>
module attributes {stable_mosaic.version = 11 : i64} {
  func.func @_basic_block_kernel(%arg0: i32, %arg1: memref<2x16x128xf32, #tpu.memory_space<vmem>>, %arg2: memref<3x128x128xbf16, #tpu.memory_space<vmem>>, %arg3: memref<3x128x128xbf16, #tpu.memory_space<vmem>>, %arg4: memref<2x128xf32, #tpu.memory_space<vmem>>, %arg5: memref<2x16x128xf32, #tpu.memory_space<vmem>>, %arg6: memref<36x128xf32, #tpu.memory_space<vmem>>, %arg7: memref<36x128xf32, #tpu.memory_space<vmem>>) attributes {dimension_semantics = [#tpu.dimension_semantics<parallel>], iteration_bounds = array<i64: 1>, scalar_prefetch = 0 : i64, scratch_operands = 2 : i64, tpu.core_type = #tpu.core_type<tc>, window_params = [{transform_indices = @transform_0, window_bounds = array<i64: 2, 16, 128>}, {pipeline_mode = #tpu.pipeline_mode<synchronous>, transform_indices = @transform_1, window_bounds = array<i64: 3, 128, 128>}, {pipeline_mode = #tpu.pipeline_mode<synchronous>, transform_indices = @transform_2, window_bounds = array<i64: 3, 128, 128>}, {pipeline_mode = #tpu.pipeline_mode<synchronous>, transform_indices = @transform_3, window_bounds = array<i64: 2, 128>}, {transform_indices = @transform_4, window_bounds = array<i64: 2, 16, 128>}]} {
    %cst = arith.constant 0.000000e+00 : f32
    %0 = vector.broadcast %cst : f32 to vector<1x128xf32>
    %c0 = arith.constant 0 : index
    %c0_0 = arith.constant 0 : index
    %1 = vector.load %arg6[%c0, %c0_0] : memref<36x128xf32, #tpu.memory_space<vmem>>, vector<1x128xf32>
    tpu.vector_store %arg6[%c0, %c0_0], %0 {strides = array<i32>} : memref<36x128xf32, #tpu.memory_space<vmem>>, vector<1x128xf32>,
    %c0_1 = arith.constant 0 : index
    %c0_2 = arith.constant 0 : index
    %c0_3 = arith.constant 0 : index
    %2 = vector.load %arg1[%c0_1, %c0_2, %c0_3] : memref<2x16x128xf32, #tpu.memory_space<vmem>>, vector<1x16x128xf32>
    %3 = vector.shape_cast %2 : vector<1x16x128xf32> to vector<16x128xf32>
    %c1 = arith.constant 1 : index
    %c0_4 = arith.constant 0 : index
    %4 = vector.load %arg6[%c1, %c0_4] : memref<36x128xf32, #tpu.memory_space<vmem>>, vector<16x128xf32>
    tpu.vector_store %arg6[%c1, %c0_4], %3 {strides = array<i32>} : memref<36x128xf32, #tpu.memory_space<vmem>>, vector<16x128xf32>,
    %c17 = arith.constant 17 : index
    %c0_5 = arith.constant 0 : index
    %5 = vector.load %arg6[%c17, %c0_5] : memref<36x128xf32, #tpu.memory_space<vmem>>, vector<1x128xf32>
    tpu.vector_store %arg6[%c17, %c0_5], %0 {strides = array<i32>} : memref<36x128xf32, #tpu.memory_space<vmem>>, vector<1x128xf32>,
    %c18 = arith.constant 18 : index
    %c0_6 = arith.constant 0 : index
    %6 = vector.load %arg6[%c18, %c0_6] : memref<36x128xf32, #tpu.memory_space<vmem>>, vector<1x128xf32>
    tpu.vector_store %arg6[%c18, %c0_6], %0 {strides = array<i32>} : memref<36x128xf32, #tpu.memory_space<vmem>>, vector<1x128xf32>,
    %c1_7 = arith.constant 1 : index
    %c0_8 = arith.constant 0 : index
    %c0_9 = arith.constant 0 : index
    %7 = vector.load %arg1[%c1_7, %c0_8, %c0_9] : memref<2x16x128xf32, #tpu.memory_space<vmem>>, vector<1x16x128xf32>
    %8 = vector.shape_cast %7 : vector<1x16x128xf32> to vector<16x128xf32>
    %c19 = arith.constant 19 : index
    %c0_10 = arith.constant 0 : index
    %9 = vector.load %arg6[%c19, %c0_10] : memref<36x128xf32, #tpu.memory_space<vmem>>, vector<16x128xf32>
    tpu.vector_store %arg6[%c19, %c0_10], %8 {strides = array<i32>} : memref<36x128xf32, #tpu.memory_space<vmem>>, vector<16x128xf32>,
    %c35 = arith.constant 35 : index
    %c0_11 = arith.constant 0 : index
    %10 = vector.load %arg6[%c35, %c0_11] : memref<36x128xf32, #tpu.memory_space<vmem>>, vector<1x128xf32>
    tpu.vector_store %arg6[%c35, %c0_11], %0 {strides = array<i32>} : memref<36x128xf32, #tpu.memory_space<vmem>>, vector<1x128xf32>,
    %c0_12 = arith.constant 0 : index
    %c0_13 = arith.constant 0 : index
    %11 = vector.load %arg6[%c0_12, %c0_13] : memref<36x128xf32, #tpu.memory_space<vmem>>, vector<34x128xf32>
    %12 = arith.truncf %11 : vector<34x128xf32> to vector<34x128xbf16>
    %c0_14 = arith.constant 0 : index
    %c0_15 = arith.constant 0 : index
    %c0_16 = arith.constant 0 : index
    %13 = vector.load %arg2[%c0_14, %c0_15, %c0_16] : memref<3x128x128xbf16, #tpu.memory_space<vmem>>, vector<1x128x128xbf16>
    %14 = vector.shape_cast %13 : vector<1x128x128xbf16> to vector<128x128xbf16>
    %cst_17 = arith.constant dense<0.000000e+00> : vector<34x128xf32>
    %15 = tpu.matmul %12, %14, %cst_17 {dimension_numbers = #tpu.dot_dimension_numbers<[1], [0], [0], [1], [0, 0, 1, 1], [], []>} : vector<34x128xbf16>, vector<128x128xbf16>, vector<34x128xf32> -> vector<34x128xf32>
    %c1_18 = arith.constant 1 : index
    %c0_19 = arith.constant 0 : index
    %16 = vector.load %arg6[%c1_18, %c0_19] : memref<36x128xf32, #tpu.memory_space<vmem>>, vector<34x128xf32>
    %17 = arith.truncf %16 : vector<34x128xf32> to vector<34x128xbf16>
    %c1_20 = arith.constant 1 : index
    %c0_21 = arith.constant 0 : index
    %c0_22 = arith.constant 0 : index
    %18 = vector.load %arg2[%c1_20, %c0_21, %c0_22] : memref<3x128x128xbf16, #tpu.memory_space<vmem>>, vector<1x128x128xbf16>
    %19 = vector.shape_cast %18 : vector<1x128x128xbf16> to vector<128x128xbf16>
    %cst_23 = arith.constant dense<0.000000e+00> : vector<34x128xf32>
    %20 = tpu.matmul %17, %19, %cst_23 {dimension_numbers = #tpu.dot_dimension_numbers<[1], [0], [0], [1], [0, 0, 1, 1], [], []>} : vector<34x128xbf16>, vector<128x128xbf16>, vector<34x128xf32> -> vector<34x128xf32>
    %21 = arith.addf %15, %20 : vector<34x128xf32>
    %c2 = arith.constant 2 : index
    %c0_24 = arith.constant 0 : index
    %22 = vector.load %arg6[%c2, %c0_24] : memref<36x128xf32, #tpu.memory_space<vmem>>, vector<34x128xf32>
    %23 = arith.truncf %22 : vector<34x128xf32> to vector<34x128xbf16>
    %c2_25 = arith.constant 2 : index
    %c0_26 = arith.constant 0 : index
    %c0_27 = arith.constant 0 : index
    %24 = vector.load %arg2[%c2_25, %c0_26, %c0_27] : memref<3x128x128xbf16, #tpu.memory_space<vmem>>, vector<1x128x128xbf16>
    %25 = vector.shape_cast %24 : vector<1x128x128xbf16> to vector<128x128xbf16>
    %cst_28 = arith.constant dense<0.000000e+00> : vector<34x128xf32>
    %26 = tpu.matmul %23, %25, %cst_28 {dimension_numbers = #tpu.dot_dimension_numbers<[1], [0], [0], [1], [0, 0, 1, 1], [], []>} : vector<34x128xbf16>, vector<128x128xbf16>, vector<34x128xf32> -> vector<34x128xf32>
    %27 = arith.addf %21, %26 : vector<34x128xf32>
    %c0_29 = arith.constant 0 : index
    %c0_30 = arith.constant 0 : index
    %28 = vector.load %arg4[%c0_29, %c0_30] : memref<2x128xf32, #tpu.memory_space<vmem>>, vector<1x128xf32>
    %29 = vector.broadcast %28 : vector<1x128xf32> to vector<34x128xf32>
    %30 = arith.addf %27, %29 : vector<34x128xf32>
    %cst_31 = arith.constant 0.000000e+00 : f32
    %31 = vector.broadcast %cst_31 : f32 to vector<34x128xf32>
    %32 = arith.maximumf %30, %31 : vector<34x128xf32>
    %c1_32 = arith.constant 1 : index
    %c0_33 = arith.constant 0 : index
    %33 = vector.load %arg7[%c1_32, %c0_33] : memref<36x128xf32, #tpu.memory_space<vmem>>, vector<34x128xf32>
    tpu.vector_store %arg7[%c1_32, %c0_33], %32 {strides = array<i32>} : memref<36x128xf32, #tpu.memory_space<vmem>>, vector<34x128xf32>,
    %c0_34 = arith.constant 0 : index
    %c0_35 = arith.constant 0 : index
    %34 = vector.load %arg7[%c0_34, %c0_35] : memref<36x128xf32, #tpu.memory_space<vmem>>, vector<1x128xf32>
    tpu.vector_store %arg7[%c0_34, %c0_35], %0 {strides = array<i32>} : memref<36x128xf32, #tpu.memory_space<vmem>>, vector<1x128xf32>,
    %c35_36 = arith.constant 35 : index
    %c0_37 = arith.constant 0 : index
    %35 = vector.load %arg7[%c35_36, %c0_37] : memref<36x128xf32, #tpu.memory_space<vmem>>, vector<1x128xf32>
    tpu.vector_store %arg7[%c35_36, %c0_37], %0 {strides = array<i32>} : memref<36x128xf32, #tpu.memory_space<vmem>>, vector<1x128xf32>,
    %cst_38 = arith.constant 0.000000e+00 : f32
    %36 = vector.broadcast %cst_38 : f32 to vector<2x128xf32>
    %c17_39 = arith.constant 17 : index
    %c0_40 = arith.constant 0 : index
    %37 = vector.load %arg7[%c17_39, %c0_40] : memref<36x128xf32, #tpu.memory_space<vmem>>, vector<2x128xf32>
    tpu.vector_store %arg7[%c17_39, %c0_40], %36 {strides = array<i32>} : memref<36x128xf32, #tpu.memory_space<vmem>>, vector<2x128xf32>,
    %c0_41 = arith.constant 0 : index
    %c0_42 = arith.constant 0 : index
    %38 = vector.load %arg7[%c0_41, %c0_42] : memref<36x128xf32, #tpu.memory_space<vmem>>, vector<34x128xf32>
    %39 = arith.truncf %38 : vector<34x128xf32> to vector<34x128xbf16>
    %c0_43 = arith.constant 0 : index
    %c0_44 = arith.constant 0 : index
    %c0_45 = arith.constant 0 : index
    %40 = vector.load %arg3[%c0_43, %c0_44, %c0_45] : memref<3x128x128xbf16, #tpu.memory_space<vmem>>, vector<1x128x128xbf16>
    %41 = vector.shape_cast %40 : vector<1x128x128xbf16> to vector<128x128xbf16>
    %cst_46 = arith.constant dense<0.000000e+00> : vector<34x128xf32>
    %42 = tpu.matmul %39, %41, %cst_46 {dimension_numbers = #tpu.dot_dimension_numbers<[1], [0], [0], [1], [0, 0, 1, 1], [], []>} : vector<34x128xbf16>, vector<128x128xbf16>, vector<34x128xf32> -> vector<34x128xf32>
    %c1_47 = arith.constant 1 : index
    %c0_48 = arith.constant 0 : index
    %43 = vector.load %arg7[%c1_47, %c0_48] : memref<36x128xf32, #tpu.memory_space<vmem>>, vector<34x128xf32>
    %44 = arith.truncf %43 : vector<34x128xf32> to vector<34x128xbf16>
    %c1_49 = arith.constant 1 : index
    %c0_50 = arith.constant 0 : index
    %c0_51 = arith.constant 0 : index
    %45 = vector.load %arg3[%c1_49, %c0_50, %c0_51] : memref<3x128x128xbf16, #tpu.memory_space<vmem>>, vector<1x128x128xbf16>
    %46 = vector.shape_cast %45 : vector<1x128x128xbf16> to vector<128x128xbf16>
    %cst_52 = arith.constant dense<0.000000e+00> : vector<34x128xf32>
    %47 = tpu.matmul %44, %46, %cst_52 {dimension_numbers = #tpu.dot_dimension_numbers<[1], [0], [0], [1], [0, 0, 1, 1], [], []>} : vector<34x128xbf16>, vector<128x128xbf16>, vector<34x128xf32> -> vector<34x128xf32>
    %48 = arith.addf %42, %47 : vector<34x128xf32>
    %c2_53 = arith.constant 2 : index
    %c0_54 = arith.constant 0 : index
    %49 = vector.load %arg7[%c2_53, %c0_54] : memref<36x128xf32, #tpu.memory_space<vmem>>, vector<34x128xf32>
    %50 = arith.truncf %49 : vector<34x128xf32> to vector<34x128xbf16>
    %c2_55 = arith.constant 2 : index
    %c0_56 = arith.constant 0 : index
    %c0_57 = arith.constant 0 : index
    %51 = vector.load %arg3[%c2_55, %c0_56, %c0_57] : memref<3x128x128xbf16, #tpu.memory_space<vmem>>, vector<1x128x128xbf16>
    %52 = vector.shape_cast %51 : vector<1x128x128xbf16> to vector<128x128xbf16>
    %cst_58 = arith.constant dense<0.000000e+00> : vector<34x128xf32>
    %53 = tpu.matmul %50, %52, %cst_58 {dimension_numbers = #tpu.dot_dimension_numbers<[1], [0], [0], [1], [0, 0, 1, 1], [], []>} : vector<34x128xbf16>, vector<128x128xbf16>, vector<34x128xf32> -> vector<34x128xf32>
    %54 = arith.addf %48, %53 : vector<34x128xf32>
    %c1_59 = arith.constant 1 : index
    %c0_60 = arith.constant 0 : index
    %55 = vector.load %arg4[%c1_59, %c0_60] : memref<2x128xf32, #tpu.memory_space<vmem>>, vector<1x128xf32>
    %56 = vector.broadcast %55 : vector<1x128xf32> to vector<34x128xf32>
    %57 = arith.addf %54, %56 : vector<34x128xf32>
    %58 = vector.extract_strided_slice %57 {offsets = [0, 0], sizes = [16, 128], strides = [1, 1]} : vector<34x128xf32> to vector<16x128xf32>
    %c0_61 = arith.constant 0 : index
    %c0_62 = arith.constant 0 : index
    %c0_63 = arith.constant 0 : index
    %59 = vector.load %arg1[%c0_61, %c0_62, %c0_63] : memref<2x16x128xf32, #tpu.memory_space<vmem>>, vector<1x16x128xf32>
    %60 = vector.shape_cast %59 : vector<1x16x128xf32> to vector<16x128xf32>
    %61 = arith.addf %58, %60 : vector<16x128xf32>
    %cst_64 = arith.constant 0.000000e+00 : f32
    %62 = vector.broadcast %cst_64 : f32 to vector<16x128xf32>
    %63 = arith.maximumf %61, %62 : vector<16x128xf32>
    %c0_65 = arith.constant 0 : index
    %c0_66 = arith.constant 0 : index
    %c0_67 = arith.constant 0 : index
    %64 = vector.load %arg5[%c0_65, %c0_66, %c0_67] : memref<2x16x128xf32, #tpu.memory_space<vmem>>, vector<1x16x128xf32>
    %65 = vector.shape_cast %64 : vector<1x16x128xf32> to vector<16x128xf32>
    %66 = vector.shape_cast %63 : vector<16x128xf32> to vector<1x16x128xf32>
    tpu.vector_store %arg5[%c0_65, %c0_66, %c0_67], %66 {strides = array<i32>} : memref<2x16x128xf32, #tpu.memory_space<vmem>>, vector<1x16x128xf32>,
    %67 = vector.extract_strided_slice %57 {offsets = [18, 0], sizes = [16, 128], strides = [1, 1]} : vector<34x128xf32> to vector<16x128xf32>
    %c1_68 = arith.constant 1 : index
    %c0_69 = arith.constant 0 : index
    %c0_70 = arith.constant 0 : index
    %68 = vector.load %arg1[%c1_68, %c0_69, %c0_70] : memref<2x16x128xf32, #tpu.memory_space<vmem>>, vector<1x16x128xf32>
    %69 = vector.shape_cast %68 : vector<1x16x128xf32> to vector<16x128xf32>
    %70 = arith.addf %67, %69 : vector<16x128xf32>
    %cst_71 = arith.constant 0.000000e+00 : f32
    %71 = vector.broadcast %cst_71 : f32 to vector<16x128xf32>
    %72 = arith.maximumf %70, %71 : vector<16x128xf32>
    %c1_72 = arith.constant 1 : index
    %c0_73 = arith.constant 0 : index
    %c0_74 = arith.constant 0 : index
    %73 = vector.load %arg5[%c1_72, %c0_73, %c0_74] : memref<2x16x128xf32, #tpu.memory_space<vmem>>, vector<1x16x128xf32>
    %74 = vector.shape_cast %73 : vector<1x16x128xf32> to vector<16x128xf32>
    %75 = vector.shape_cast %72 : vector<16x128xf32> to vector<1x16x128xf32>
    tpu.vector_store %arg5[%c1_72, %c0_73, %c0_74], %75 {strides = array<i32>} : memref<2x16x128xf32, #tpu.memory_space<vmem>>, vector<1x16x128xf32>,
    return
  }
  func.func @transform_0(%arg0: i32) -> (i32, i32, i32) {
    %c0_i32 = arith.constant 0 : i32
    %c0_i32_0 = arith.constant 0 : i32
    %c0_i32_1 = arith.constant 0 : i32
    return %arg0, %c0_i32, %c0_i32_0 : i32, i32, i32
  }
  func.func @transform_1(%arg0: i32) -> (i32, i32, i32) {
    %c0_i32 = arith.constant 0 : i32
    %c0_i32_0 = arith.constant 0 : i32
    %c0_i32_1 = arith.constant 0 : i32
    %c0_i32_2 = arith.constant 0 : i32
    return %c0_i32, %c0_i32_0, %c0_i32_1 : i32, i32, i32
  }
  func.func @transform_2(%arg0: i32) -> (i32, i32, i32) {
    %c0_i32 = arith.constant 0 : i32
    %c0_i32_0 = arith.constant 0 : i32
    %c0_i32_1 = arith.constant 0 : i32
    %c0_i32_2 = arith.constant 0 : i32
    return %c0_i32, %c0_i32_0, %c0_i32_1 : i32, i32, i32
  }
  func.func @transform_3(%arg0: i32) -> (i32, i32) {
    %c0_i32 = arith.constant 0 : i32
    %c0_i32_0 = arith.constant 0 : i32
    %c0_i32_1 = arith.constant 0 : i32
    return %c0_i32, %c0_i32_0 : i32, i32
  }
  func.func @transform_4(%arg0: i32) -> (i32, i32, i32) {
    %c0_i32 = arith.constant 0 : i32
    %c0_i32_0 = arith.constant 0 : i32
    %c0_i32_1 = arith.constant 0 : i32
    return %arg0, %c0_i32, %c0_i32_0 : i32, i32, i32
  }
}

</mosaic_0001>

<bundles_post_ra>
// kernel: tile.23
= control target key start
LH: loop header
LB: loop body
LE: loop exit
PB: predicated region body
PF: predicated region fallthrough
CT: control target
= control target key end

     0   :  { %s28_s0 = inlined_call_operand.vmem [shape: f32[8], index: 0, kind: input, shape index: {}]   ;;  %s29_s1 = inlined_call_operand.vmem [shape: f32[16,8], index: 1, kind: output, shape index: {}]  }
   0x1   :  { %v4_v0 = vld [vmem:[%s28_s0] ss:$0 sm:$0xff] }
   0x2   :  { %5 = vst [vmem:[%s29_s1] sm:$0xff] %v4_v0  ;;  %8 = vst [vmem:[%s29_s1 + $0x8] sm:$0xff] %v4_v0 }

// kernel: mul.17
= control target key start
LH: loop header
LB: loop body
LE: loop exit
PB: predicated region body
PF: predicated region fallthrough
CT: control target
= control target key end

     0   :  { %s131_s10 = smov 120   ;;  %s132_s11 = smov 104   ;;  %vm3_vm0 = vcmask 64512   ;;  %vm9_vm1 = vcmask 1048512   ;;  %vm15_vm2 = vcmask 982912   ;;  %vm21_vm3 = vcmask 917312   ;;  %s207_s0 = inlined_call_operand.vmem [shape: f32[16,8], index: 0, kind: input, shape index: {}]   ;;  %s208_s1 = inlined_call_operand.vmem [shape: f32[128], index: 1, kind: output, shape index: {}]  }
   0x1   :  { %v101_v0 = vld [vmem:[%s207_s0 + $0xf] sm:$0x1]   ;;  %v103_v1 = vld [vmem:[%s207_s0 + $0xd] sm:$0x1]   ;;  %v102_v2 = vld [vmem:[%s207_s0 + $0xe] sm:$0x1]  }
   0x2   :  { %7 = vrot.lane.b32.xlu0 %v101_v0, %s131_s10  ;;  %19 = vrot.lane.b32.xlu1 %v103_v1, %s132_s11  ;;  %v104_v3 = vld [vmem:[%s207_s0 + $0xc] sm:$0x1]   ;;  %s133_s16 = smov 112   ;;  %s134_s17 = smov 96   ;;  %v105_v4 = vld [vmem:[%s207_s0 + $0xb] sm:$0x1]  }
   0x3   :  { %v106_v5 = vld [vmem:[%s207_s0 + $0xa] sm:$0x1]   ;;  %v2_v6 = vld [vmem:[%s207_s0] sm:$0x1]   ;;  %s135_s24 = smov 88   ;;  %s136_s25 = smov 80  }
   0x4   :  { %4 = vst.msk [vmem:[#allocation0] sm:$0x1] %vm3_vm0, %v2_v6   ;;  %v107_v7 = vld [vmem:[%s207_s0 + $0x9] sm:$0x1]   ;;  %v108_v8 = vld [vmem:[%s207_s0 + $0x8] sm:$0x1]  }
   0x5   :  { %s137_s30 = smov 72   ;;  %s138_s2 = smov 64   ;;  %v109_v9 = vld [vmem:[%s207_s0 + $0x7] sm:$0x1]   ;;  %v110_v10 = vld [vmem:[%s207_s0 + $0x6] sm:$0x1]  }
   0x6   :  { %13 = vrot.lane.b32.xlu0 %v102_v2, %s133_s16  ;;  %25 = vrot.lane.b32.xlu1 %v104_v3, %s134_s17  ;;  %s139_s7 = smov 56   ;;  %s140_s8 = smov 48   ;;  %v111_v11 = vld [vmem:[%s207_s0 + $0x5] sm:$0x1]   ;;  %v112_v12 = vld [vmem:[%s207_s0 + $0x4] sm:$0x1]  }
   0x7   :  { %s141_s13 = smov 40   ;;  %s142_s14 = smov 32   ;;  %v113_v13 = vld [vmem:[%s207_s0 + $0x3] sm:$0x1]   ;;  %v114_v14 = vld [vmem:[%s207_s0 + $0x2] sm:$0x1]  }
   0x8   :  { %s143_s19 = smov 24   ;;  %s144_s20 = smov 16   ;;  %v115_v15 = vld [vmem:[%s207_s0 + $0x1] sm:$0x1]   ;;  %vm27_vm4 = vcmask 851712   ;;  %vm33_vm5 = vcmask 786112  }
   0x9   :  { %s145_s0 = smov 8   ;;  %vm39_vm6 = vcmask 720512   ;;  %vm45_vm7 = vcmask 654912   ;;  %vm51_vm8 = vcmask 589312   ;;  %vm57_vm9 = vcmask 523712  }
   0xa   :  { %31 = vrot.lane.b32.xlu0 %v105_v4, %s135_s24  ;;  %37 = vrot.lane.b32.xlu1 %v106_v5, %s136_s25  ;;  %vm63_vm10 = vcmask 458112   ;;  %vm69_vm11 = vcmask 392512   ;;  %vm75_vm12 = vcmask 326912   ;;  %vm81_vm13 = vcmask 261312  }
   0xb   :  { %vm87_vm14 = vcmask 195712   ;;  %vm93_vm15 = vcmask 130112  }
   0xe   :  { %43 = vrot.lane.b32.xlu0 %v107_v7, %s137_s30  ;;  %49 = vrot.lane.b32.xlu1 %v108_v8, %s138_s2 }
  0x12   :  { %55 = vrot.lane.b32.xlu0 %v109_v9, %s139_s7  ;;  %61 = vrot.lane.b32.xlu1 %v110_v10, %s140_s8 }
  0x16   :  { %67 = vrot.lane.b32.xlu0 %v111_v11, %s141_s13  ;;  %73 = vrot.lane.b32.xlu1 %v112_v12, %s142_s14 }
  0x1a   :  { %79 = vrot.lane.b32.xlu0 %v113_v13, %s143_s19  ;;  %85 = vrot.lane.b32.xlu1 %v114_v14, %s144_s20 }
  0x1e   :  { %91 = vrot.lane.b32.xlu0 %v115_v15, %s145_s0 }
  0x74   :  { %v8_v16 = vpop.permute.xlu0 %7   ;;  %v20_v17 = vpop.permute.xlu1 %19  }
  0x75   :  { %10 = vst.msk [vmem:[#allocation0] sm:$0x1] %vm9_vm1, %v8_v16  }
  0x78   :  { %v14_v18 = vpop.permute.xlu0 %13   ;;  %v26_v19 = vpop.permute.xlu1 %25  }
  0x79   :  { %16 = vst.msk [vmem:[#allocation0] sm:$0x1] %vm15_vm2, %v14_v18  }
  0x7a   :  { %22 = vst.msk [vmem:[#allocation0] sm:$0x1] %vm21_vm3, %v20_v17  }
  0x7b   :  { %28 = vst.msk [vmem:[#allocation0] sm:$0x1] %vm27_vm4, %v26_v19  }
  0x7c   :  { %v32_v20 = vpop.permute.xlu0 %31   ;;  %v38_v21 = vpop.permute.xlu1 %37  }
  0x7d   :  { %34 = vst.msk [vmem:[#allocation0] sm:$0x1] %vm33_vm5, %v32_v20  }
  0x7e   :  { %40 = vst.msk [vmem:[#allocation0] sm:$0x1] %vm39_vm6, %v38_v21  }
  0x80   :  { %v44_v22 = vpop.permute.xlu0 %43   ;;  %v50_v23 = vpop.permute.xlu1 %49  }
  0x81   :  { %46 = vst.msk [vmem:[#allocation0] sm:$0x1] %vm45_vm7, %v44_v22  }
  0x82   :  { %52 = vst.msk [vmem:[#allocation0] sm:$0x1] %vm51_vm8, %v50_v23  }
  0x84   :  { %v56_v24 = vpop.permute.xlu0 %55   ;;  %v62_v25 = vpop.permute.xlu1 %61  }
  0x85   :  { %58 = vst.msk [vmem:[#allocation0] sm:$0x1] %vm57_vm9, %v56_v24  }
  0x86   :  { %64 = vst.msk [vmem:[#allocation0] sm:$0x1] %vm63_vm10, %v62_v25  }
  0x88   :  { %v68_v26 = vpop.permute.xlu0 %67   ;;  %v74_v27 = vpop.permute.xlu1 %73  }
  0x89   :  { %70 = vst.msk [vmem:[#allocation0] sm:$0x1] %vm69_vm11, %v68_v26  }
  0x8a   :  { %76 = vst.msk [vmem:[#allocation0] sm:$0x1] %vm75_vm12, %v74_v27  }
  0x8c   :  { %v80_v28 = vpop.permute.xlu0 %79   ;;  %v86_v29 = vpop.permute.xlu1 %85  }
  0x8d   :  { %82 = vst.msk [vmem:[#allocation0] sm:$0x1] %vm81_vm13, %v80_v28  }
  0x8e   :  { %88 = vst.msk [vmem:[#allocation0] sm:$0x1] %vm87_vm14, %v86_v29  }
  0x90   :  { %v92_v30 = vpop.permute.xlu0 %91  }
  0x91   :  { %94 = vst.msk [vmem:[#allocation0] sm:$0x1] %vm93_vm15, %v92_v30  }
  0x98   :  { %v98_v31 = vld [vmem:[#allocation0] sm:$0x1] }
  0x99   :  { %100 = vst [vmem:[%s208_s1] sm:$0x1] %v98_v31 }

// kernel: tile.38
= control target key start
LH: loop header
LB: loop body
LE: loop exit
PB: predicated region body
PF: predicated region fallthrough
CT: control target
= control target key end

     0   :  { %s131_s10 = smov 120   ;;  %s132_s11 = smov 104   ;;  %vm3_vm0 = vcmask 64512   ;;  %vm9_vm1 = vcmask 1048512   ;;  %vm15_vm2 = vcmask 982912   ;;  %vm21_vm3 = vcmask 917312   ;;  %s207_s0 = inlined_call_operand.vmem [shape: f32[16,8], index: 0, kind: input, shape index: {}]   ;;  %s208_s1 = inlined_call_operand.vmem [shape: f32[1,128], index: 1, kind: output, shape index: {}]  }
   0x1   :  { %v101_v0 = vld [vmem:[%s207_s0 + $0xf] sm:$0x1]   ;;  %v103_v1 = vld [vmem:[%s207_s0 + $0xd] sm:$0x1]   ;;  %v102_v2 = vld [vmem:[%s207_s0 + $0xe] sm:$0x1]  }
   0x2   :  { %7 = vrot.lane.b32.xlu0 %v101_v0, %s131_s10  ;;  %19 = vrot.lane.b32.xlu1 %v103_v1, %s132_s11  ;;  %v104_v3 = vld [vmem:[%s207_s0 + $0xc] sm:$0x1]   ;;  %s133_s16 = smov 112   ;;  %s134_s17 = smov 96   ;;  %v105_v4 = vld [vmem:[%s207_s0 + $0xb] sm:$0x1]  }
   0x3   :  { %v106_v5 = vld [vmem:[%s207_s0 + $0xa] sm:$0x1]   ;;  %v2_v6 = vld [vmem:[%s207_s0] sm:$0x1]   ;;  %s135_s24 = smov 88   ;;  %s136_s25 = smov 80  }
   0x4   :  { %4 = vst.msk [vmem:[#allocation0] sm:$0x1] %vm3_vm0, %v2_v6   ;;  %v107_v7 = vld [vmem:[%s207_s0 + $0x9] sm:$0x1]   ;;  %v108_v8 = vld [vmem:[%s207_s0 + $0x8] sm:$0x1]  }
   0x5   :  { %s137_s30 = smov 72   ;;  %s138_s2 = smov 64   ;;  %v109_v9 = vld [vmem:[%s207_s0 + $0x7] sm:$0x1]   ;;  %v110_v10 = vld [vmem:[%s207_s0 + $0x6] sm:$0x1]  }
   0x6   :  { %13 = vrot.lane.b32.xlu0 %v102_v2, %s133_s16  ;;  %25 = vrot.lane.b32.xlu1 %v104_v3, %s134_s17  ;;  %s139_s7 = smov 56   ;;  %s140_s8 = smov 48   ;;  %v111_v11 = vld [vmem:[%s207_s0 + $0x5] sm:$0x1]   ;;  %v112_v12 = vld [vmem:[%s207_s0 + $0x4] sm:$0x1]  }
   0x7   :  { %s141_s13 = smov 40   ;;  %s142_s14 = smov 32   ;;  %v113_v13 = vld [vmem:[%s207_s0 + $0x3] sm:$0x1]   ;;  %v114_v14 = vld [vmem:[%s207_s0 + $0x2] sm:$0x1]  }
   0x8   :  { %s143_s19 = smov 24   ;;  %s144_s20 = smov 16   ;;  %v115_v15 = vld [vmem:[%s207_s0 + $0x1] sm:$0x1]   ;;  %vm27_vm4 = vcmask 851712   ;;  %vm33_vm5 = vcmask 786112  }
   0x9   :  { %s145_s0 = smov 8   ;;  %vm39_vm6 = vcmask 720512   ;;  %vm45_vm7 = vcmask 654912   ;;  %vm51_vm8 = vcmask 589312   ;;  %vm57_vm9 = vcmask 523712  }
   0xa   :  { %31 = vrot.lane.b32.xlu0 %v105_v4, %s135_s24  ;;  %37 = vrot.lane.b32.xlu1 %v106_v5, %s136_s25  ;;  %vm63_vm10 = vcmask 458112   ;;  %vm69_vm11 = vcmask 392512   ;;  %vm75_vm12 = vcmask 326912   ;;  %vm81_vm13 = vcmask 261312  }
   0xb   :  { %vm87_vm14 = vcmask 195712   ;;  %vm93_vm15 = vcmask 130112  }
   0xe   :  { %43 = vrot.lane.b32.xlu0 %v107_v7, %s137_s30  ;;  %49 = vrot.lane.b32.xlu1 %v108_v8, %s138_s2 }
  0x12   :  { %55 = vrot.lane.b32.xlu0 %v109_v9, %s139_s7  ;;  %61 = vrot.lane.b32.xlu1 %v110_v10, %s140_s8 }
  0x16   :  { %67 = vrot.lane.b32.xlu0 %v111_v11, %s141_s13  ;;  %73 = vrot.lane.b32.xlu1 %v112_v12, %s142_s14 }
  0x1a   :  { %79 = vrot.lane.b32.xlu0 %v113_v13, %s143_s19  ;;  %85 = vrot.lane.b32.xlu1 %v114_v14, %s144_s20 }
  0x1e   :  { %91 = vrot.lane.b32.xlu0 %v115_v15, %s145_s0 }
  0x74   :  { %v8_v16 = vpop.permute.xlu0 %7   ;;  %v20_v17 = vpop.permute.xlu1 %19  }
  0x75   :  { %10 = vst.msk [vmem:[#allocation0] sm:$0x1] %vm9_vm1, %v8_v16  }
  0x78   :  { %v14_v18 = vpop.permute.xlu0 %13   ;;  %v26_v19 = vpop.permute.xlu1 %25  }
  0x79   :  { %16 = vst.msk [vmem:[#allocation0] sm:$0x1] %vm15_vm2, %v14_v18  }
  0x7a   :  { %22 = vst.msk [vmem:[#allocation0] sm:$0x1] %vm21_vm3, %v20_v17  }
  0x7b   :  { %28 = vst.msk [vmem:[#allocation0] sm:$0x1] %vm27_vm4, %v26_v19  }
  0x7c   :  { %v32_v20 = vpop.permute.xlu0 %31   ;;  %v38_v21 = vpop.permute.xlu1 %37  }
  0x7d   :  { %34 = vst.msk [vmem:[#allocation0] sm:$0x1] %vm33_vm5, %v32_v20  }
  0x7e   :  { %40 = vst.msk [vmem:[#allocation0] sm:$0x1] %vm39_vm6, %v38_v21  }
  0x80   :  { %v44_v22 = vpop.permute.xlu0 %43   ;;  %v50_v23 = vpop.permute.xlu1 %49  }
  0x81   :  { %46 = vst.msk [vmem:[#allocation0] sm:$0x1] %vm45_vm7, %v44_v22  }
  0x82   :  { %52 = vst.msk [vmem:[#allocation0] sm:$0x1] %vm51_vm8, %v50_v23  }
  0x84   :  { %v56_v24 = vpop.permute.xlu0 %55   ;;  %v62_v25 = vpop.permute.xlu1 %61  }
  0x85   :  { %58 = vst.msk [vmem:[#allocation0] sm:$0x1] %vm57_vm9, %v56_v24  }
  0x86   :  { %64 = vst.msk [vmem:[#allocation0] sm:$0x1] %vm63_vm10, %v62_v25  }
  0x88   :  { %v68_v26 = vpop.permute.xlu0 %67   ;;  %v74_v27 = vpop.permute.xlu1 %73  }
  0x89   :  { %70 = vst.msk [vmem:[#allocation0] sm:$0x1] %vm69_vm11, %v68_v26  }
  0x8a   :  { %76 = vst.msk [vmem:[#allocation0] sm:$0x1] %vm75_vm12, %v74_v27  }
  0x8c   :  { %v80_v28 = vpop.permute.xlu0 %79   ;;  %v86_v29 = vpop.permute.xlu1 %85  }
  0x8d   :  { %82 = vst.msk [vmem:[#allocation0] sm:$0x1] %vm81_vm13, %v80_v28  }
  0x8e   :  { %88 = vst.msk [vmem:[#allocation0] sm:$0x1] %vm87_vm14, %v86_v29  }
  0x90   :  { %v92_v30 = vpop.permute.xlu0 %91  }
  0x91   :  { %94 = vst.msk [vmem:[#allocation0] sm:$0x1] %vm93_vm15, %v92_v30  }
  0x98   :  { %v98_v31 = vld [vmem:[#allocation0] sm:$0x1] }
  0x99   :  { %100 = vst [vmem:[%s208_s1] sm:$0x1] %v98_v31 }

// kernel: basic_block_forward.1
= control target key start
LH: loop header
LB: loop body
LE: loop exit
PB: predicated region body
PF: predicated region fallthrough
CT: control target
= control target key end

     0   :  { %v1284_v0 = vmov 0.0   ;;  %vm1285_vm0 = vmmov 0   ;;  %vm858_vm1 = vcmask 1041408   ;;  %s1597_s1 = inlined_call_operand.vmem [shape: bf16[3,128,128], index: 1, kind: input, shape index: {}]   ;;  %s1598_s0 = inlined_call_operand.vmem [shape: f32[2,16,128], index: 0, kind: input, shape index: {}]   ;;  %s1599_s2 = inlined_call_operand.vmem [shape: bf16[3,128,128], index: 2, kind: input, shape index: {}]   ;;  %s1600_s3 = inlined_call_operand.vmem [shape: f32[2,128], index: 3, kind: input, shape index: {}]   ;;  %s1601_s4 = inlined_call_operand.vmem [shape: f32[2,16,128], index: 4, kind: output, shape index: {}]  }
   0x1   :  { %1066 = vmatprep.subr.bf16.mxu0 %v1284_v0  ;;  %18 = vst [vmem:[#allocation2] sm:$0x1] %v1284_v0  ;;  %23 = vst [vmem:[#allocation2 + $0x11] sm:$0x1] %v1284_v0  ;;  %1094 = vmatprep.subr.bf16.mxu1 %v1284_v0  ;;  %v1236_v1 = vld [vmem:[%s1597_s1 + $0x40] sm:$0xff]   ;;  %v1238_v3 = vld [vmem:[%s1597_s1 + $0x48] sm:$0xff]  }
   0x2   :  { %24 = vst [vmem:[#allocation2 + $0x12] sm:$0x1] %v1284_v0  ;;  %30 = vst [vmem:[#allocation2 + $0x23] sm:$0x1] %v1284_v0  ;;  %v1237_v2 = vld [vmem:[%s1597_s1] sm:$0xff]   ;;  %1082 = vmatprep.mubr.msk.bf16.mxu0 %vm1285_vm0, %v1284_v0  ;;  %1110 = vmatprep.mubr.msk.bf16.mxu1 %vm1285_vm0, %v1284_v0  ;;  %v1239_v4 = vld [vmem:[%s1597_s1 + $0x8] sm:$0xff]  }
   0x3   :  { %442 = vst [vmem:[#allocation3] sm:$0x1] %v1284_v0  ;;  %443 = vst [vmem:[#allocation3 + $0x23] sm:$0x1] %v1284_v0  ;;  %1067 = vmatpush3.bf16.msra.mxu0 %v1236_v1  ;;  %1095 = vmatpush3.bf16.msra.mxu1 %v1237_v2  ;;  %v1240_v5 = vld [vmem:[%s1597_s1 + $0x50] sm:$0xff]   ;;  %v1242_v7 = vld [vmem:[%s1597_s1 + $0x58] sm:$0xff]  }
   0x4   :  { %1068 = vmatprep.subr.bf16.mxu0 %v1284_v0  ;;  %1096 = vmatprep.subr.bf16.mxu1 %v1284_v0  ;;  %v1241_v6 = vld [vmem:[%s1597_s1 + $0x10] sm:$0xff]   ;;  %v1243_v8 = vld [vmem:[%s1597_s1 + $0x18] sm:$0xff]   ;;  %v1244_v9 = vld [vmem:[%s1597_s1 + $0x60] sm:$0xff]  }
   0x5   :  { %v1245_v10 = vld [vmem:[%s1597_s1 + $0x20] sm:$0xff]   ;;  %v1369_v12 = vld [vmem:[%s1598_s0 + $0x8] sm:$0xff]  ;;  %v1383_v15 = vld [vmem:[%s1598_s0 + $0x10] sm:$0xff] }
   0x6   :  { %v1364_v11 = vld [vmem:[%s1598_s0] sm:$0xff]  ;;  %22 = vst [vmem:[#allocation2 + $0x9] sm:$0xff] %v1369_v12  ;;  %v1246_v13 = vld [vmem:[%s1597_s1 + $0x68] sm:$0xff]   ;;  %v1389_v16 = vld [vmem:[%s1598_s0 + $0x18] sm:$0xff] }
   0x7   :  { %1069 = vmatpush3.bf16.msra.mxu0 %v1238_v3  ;;  %1097 = vmatpush3.bf16.msra.mxu1 %v1239_v4  ;;  %21 = vst [vmem:[#allocation2 + $0x1] sm:$0xff] %v1364_v11  ;;  %v1247_v14 = vld [vmem:[%s1597_s1 + $0x28] sm:$0xff]   ;;  %28 = vst [vmem:[#allocation2 + $0x13] sm:$0xff] %v1383_v15  ;;  %v1248_v17 = vld [vmem:[%s1597_s1 + $0x70] sm:$0xff]   ;;  %v60_v23 = vpack.c.bf16 %v1369_v12, %v1364_v11 }
   0x8   :  { %1070 = vmatprep.subr.bf16.mxu0 %v1284_v0  ;;  %1098 = vmatprep.subr.bf16.mxu1 %v1284_v0  ;;  %29 = vst [vmem:[#allocation2 + $0x1b] sm:$0xff] %v1389_v16  ;;  %v1249_v18 = vld [vmem:[%s1597_s1 + $0x30] sm:$0xff]   ;;  %v1250_v19 = vld [vmem:[%s1597_s1 + $0x78] sm:$0xff]   ;;  %v1252_v25 = vld [vmem:[%s1597_s1 + $0x80] sm:$0xff]  }
   0x9   :  { %v1251_v20 = vld [vmem:[%s1597_s1 + $0x38] sm:$0xff]   ;;  %v1253_v26 = vld [vmem:[%s1597_s1 + $0x88] sm:$0xff]   ;;  %v1254_v32 = vld [vmem:[%s1597_s1 + $0x90] sm:$0xff]  }
   0xa   :  { %v1255_v34 = vld [vmem:[%s1597_s1 + $0x98] sm:$0xff]   ;;  %v1256_v38 = vld [vmem:[%s1597_s1 + $0xa0] sm:$0xff]   ;;  %v1257_v40 = vld [vmem:[%s1597_s1 + $0xa8] sm:$0xff]  }
   0xb   :  { %1071 = vmatpush3.bf16.msra.mxu0 %v1240_v5  ;;  %1099 = vmatpush3.bf16.msra.mxu1 %v1241_v6  ;;  %v1258_v41 = vld [vmem:[%s1597_s1 + $0xb0] sm:$0xff]   ;;  %v1259_v42 = vld [vmem:[%s1597_s1 + $0xb8] sm:$0xff]   ;;  %v1260_v51 = vld [vmem:[%s1599_s2 + $0x40] sm:$0xff]  }
   0xc   :  { %1072 = vmatprep.subr.bf16.mxu0 %v1284_v0  ;;  %1100 = vmatprep.subr.bf16.mxu1 %v1284_v0  ;;  %v1261_v52 = vld [vmem:[%s1599_s2] sm:$0xff]   ;;  %v1262_v53 = vld [vmem:[%s1599_s2 + $0x48] sm:$0xff]   ;;  %v1264_v54 = vld [vmem:[%s1599_s2 + $0x50] sm:$0xff]  }
   0xd   :  { %v289_v44 = vld [vmem:[#allocation2 + $0xa] sm:$0xff]  ;;  %v1266_v57 = vld [vmem:[%s1599_s2 + $0x58] sm:$0xff]   ;;  %v1268_v58 = vld [vmem:[%s1599_s2 + $0x60] sm:$0xff]  }
   0xe   :  { %v31_v21 = vld [vmem:[#allocation2] sm:$0xff]  ;;  %v32_v22 = vld [vmem:[#allocation2 + $0x8] sm:$0xff]  ;;  %v57_v27 = vld [vmem:[#allocation2 + $0x11] sm:$0xff] }
   0xf   :  { %1073 = vmatpush3.bf16.msra.mxu0 %v1242_v7  ;;  %1101 = vmatpush3.bf16.msra.mxu1 %v1243_v8  ;;  %v36_v24 = vpack.c.bf16 %v32_v22, %v31_v21  ;;  %v58_v28 = vld [vmem:[#allocation2 + $0x19] sm:$0xff]  ;;  %v33_v29 = vld [vmem:[#allocation2 + $0x10] sm:$0xff]  ;;  %v59_v35 = vld [vmem:[#allocation2 + $0x21] sm:$0x3] }
  0x10   :  { %1074 = vmatprep.subr.bf16.mxu0 %v1284_v0  ;;  %1102 = vmatprep.subr.bf16.mxu1 %v1284_v0  ;;  %v34_v30 = vld [vmem:[#allocation2 + $0x18] sm:$0xff]  ;;  %v61_v31 = vpack.c.bf16 %v58_v28, %v57_v27  ;;  %v35_v36 = vld [vmem:[#allocation2 + $0x20] sm:$0x3]  ;;  %v62_v37 = vpack.c.bf16 %v59_v35, %v59_v35  ;;  %v288_v43 = vld [vmem:[#allocation2 + $0x2] sm:$0xff] }
  0x11   :  { %v37_v33 = vpack.c.bf16 %v34_v30, %v33_v29  ;;  %v38_v39 = vpack.c.bf16 %v35_v36, %v35_v36  ;;  %v293_v45 = vpack.c.bf16 %v289_v44, %v288_v43  ;;  %v290_v46 = vld [vmem:[#allocation2 + $0x12] sm:$0xff]  ;;  %v291_v47 = vld [vmem:[#allocation2 + $0x1a] sm:$0xff]  ;;  %v292_v49 = vld [vmem:[#allocation2 + $0x22] sm:$0x3] }
  0x12   :  { %v294_v48 = vpack.c.bf16 %v291_v47, %v290_v46  ;;  %v295_v50 = vpack.c.bf16 %v292_v49, %v292_v49  ;;  %v1263_v55 = vld [vmem:[%s1599_s2 + $0x8] sm:$0xff]   ;;  %v1265_v56 = vld [vmem:[%s1599_s2 + $0x10] sm:$0xff]   ;;  %v1267_v60 = vld [vmem:[%s1599_s2 + $0x18] sm:$0xff]  }
  0x13   :  { %1075 = vmatpush3.bf16.msra.mxu0 %v1244_v9  ;;  %1103 = vmatpush3.bf16.msra.mxu1 %v1245_v10  ;;  %v1270_v59 = vld [vmem:[%s1599_s2 + $0x68] sm:$0xff]   ;;  %v1272_v61 = vld [vmem:[%s1599_s2 + $0x70] sm:$0xff]   ;;  %v1269_v62 = vld [vmem:[%s1599_s2 + $0x20] sm:$0xff]  }
  0x14   :  { %1076 = vmatprep.subr.bf16.mxu0 %v1284_v0  ;;  %1104 = vmatprep.subr.bf16.mxu1 %v1284_v0  ;;  %v1274_v63 = vld [vmem:[%s1599_s2 + $0x78] sm:$0xff]   ;;  %v1271_v1 = vld [vmem:[%s1599_s2 + $0x28] sm:$0xff]   ;;  %v1273_v2 = vld [vmem:[%s1599_s2 + $0x30] sm:$0xff]  }
  0x15   :  { %v1275_v3 = vld [vmem:[%s1599_s2 + $0x38] sm:$0xff]   ;;  %v1276_v49 = vld [vmem:[%s1599_s2 + $0x80] sm:$0xff]  }
  0x17   :  { %1077 = vmatpush3.bf16.msra.mxu0 %v1246_v13  ;;  %1105 = vmatpush3.bf16.msra.mxu1 %v1247_v14 }
  0x18   :  { %1078 = vmatprep.subr.bf16.mxu0 %v1284_v0  ;;  %1106 = vmatprep.subr.bf16.mxu1 %v1284_v0 }
  0x1b   :  { %1079 = vmatpush3.bf16.msra.mxu0 %v1248_v17  ;;  %1107 = vmatpush3.bf16.msra.mxu1 %v1249_v18 }
  0x1c   :  { %1080 = vmatprep.subr.bf16.mxu0 %v1284_v0  ;;  %1108 = vmatprep.subr.bf16.mxu1 %v1284_v0 }
  0x1f   :  { %1081 = vmatpush3.bf16.msra.mxu0 %v1250_v19  ;;  %1109 = vmatpush3.bf16.msra.mxu1 %v1251_v20 }
  0x20   :  { %1122 = vmatprep.subr.bf16.mxu0 %v1284_v0  ;;  %1150 = vmatprep.subr.bf16.mxu1 %v1284_v0 }
  0x22   :  { %1083 = vmatmul.mubr.bf16.vlgmr.msra.gmra.mrb[0].mxu0 %v60_v23  ;;  %1111 = vmatmul.mubr.bf16.vlgmr.msra.gmra.mrb[0].mxu1 %v36_v24 }
  0x23   :  { %1123 = vmatpush3.bf16.msra.mxu0 %v1252_v25  ;;  %1086 = vmatprep.mubr.msk.bf16.mxu0 %vm1285_vm0, %v1284_v0 }
  0x24   :  { %1124 = vmatprep.subr.bf16.mxu0 %v1284_v0  ;;  %1114 = vmatprep.mubr.msk.bf16.mxu1 %vm1285_vm0, %v1284_v0 }
  0x25   :  { %1151 = vmatpush3.bf16.msra.mxu1 %v1260_v51 }
  0x26   :  { %1152 = vmatprep.subr.bf16.mxu1 %v1284_v0 }
  0x27   :  { %1125 = vmatpush3.bf16.msra.mxu0 %v1253_v26 }
  0x28   :  { %1126 = vmatprep.subr.bf16.mxu0 %v1284_v0 }
  0x29   :  { %1153 = vmatpush3.bf16.msra.mxu1 %v1262_v53 }
  0x2a   :  { %1087 = vmatmul.mubr.bf16.gmra.mrb[4].mxu0 %v61_v31  ;;  %1115 = vmatmul.mubr.bf16.gmra.mrb[4].mxu1 %v37_v33 }
  0x2b   :  { %1127 = vmatpush3.bf16.msra.mxu0 %v1254_v32  ;;  %1090 = vmatprep.mubr.msk.bf16.mxu0 %vm1285_vm0, %v1284_v0 }
  0x2c   :  { %1128 = vmatprep.subr.bf16.mxu0 %v1284_v0  ;;  %1118 = vmatprep.mubr.msk.bf16.mxu1 %vm1285_vm0, %v1284_v0 }
  0x2d   :  { %1154 = vmatprep.subr.bf16.mxu1 %v1284_v0 }
  0x2e   :  { %1155 = vmatpush3.bf16.msra.mxu1 %v1264_v54 }
  0x2f   :  { %1129 = vmatpush3.bf16.msra.mxu0 %v1255_v34  ;;  %1156 = vmatprep.subr.bf16.mxu1 %v1284_v0 }
  0x30   :  { %1130 = vmatprep.subr.bf16.mxu0 %v1284_v0 }
  0x32   :  { %1091 = vmatmul.mubr.bf16.gmra.mrb[8].mxu0 %v62_v37  ;;  %1119 = vmatmul.mubr.bf16.gmra.mrb[8].mxu1 %v38_v39 }
  0x33   :  { %1131 = vmatpush3.bf16.msra.mxu0 %v1256_v38  ;;  %1138 = vmatprep.mubr.msk.bf16.mxu0 %vm1285_vm0, %v1284_v0  ;;  %v937_v38 = vld [vmem:[%s1600_s3] ss:$0 sm:$0xff] }
  0x34   :  { %1132 = vmatprep.subr.bf16.mxu0 %v1284_v0  ;;  %1166 = vmatprep.mubr.msk.bf16.mxu1 %vm1285_vm0, %v1284_v0 }
  0x35   :  { %1157 = vmatpush3.bf16.msra.mxu1 %v1266_v57  ;;  %v1277_v57 = vld [vmem:[%s1599_s2 + $0x88] sm:$0xff]  }
  0x36   :  { %1158 = vmatprep.subr.bf16.mxu1 %v1284_v0 }
  0x37   :  { %1133 = vmatpush3.bf16.msra.mxu0 %v1257_v40 }
  0x38   :  { %1134 = vmatprep.subr.bf16.mxu0 %v1284_v0 }
  0x39   :  { %1159 = vmatpush3.bf16.msra.mxu1 %v1268_v58 }
  0x3a   :  { %1160 = vmatprep.subr.bf16.mxu1 %v1284_v0 }
  0x3b   :  { %1135 = vmatpush3.bf16.msra.mxu0 %v1258_v41 }
  0x3c   :  { %1136 = vmatprep.subr.bf16.mxu0 %v1284_v0 }
  0x3d   :  { %1161 = vmatpush3.bf16.msra.mxu1 %v1270_v59 }
  0x3e   :  { %1162 = vmatprep.subr.bf16.mxu1 %v1284_v0 }
  0x3f   :  { %1137 = vmatpush3.bf16.msra.mxu0 %v1259_v42 }
  0x40   :  { %1178 = vmatprep.subr.bf16.mxu0 %v1284_v0 }
  0x41   :  { %1163 = vmatpush3.bf16.msra.mxu1 %v1272_v61 }
  0x42   :  { %1139 = vmatmul.mubr.bf16.vlgmr.msra.gmra.mrb[12].mxu0 %v293_v45  ;;  %1164 = vmatprep.subr.bf16.mxu1 %v1284_v0 }
  0x43   :  { %1142 = vmatprep.mubr.msk.bf16.mxu0 %vm1285_vm0, %v1284_v0  ;;  %1179 = vmatpush3.bf16.msra.mxu0 %v1261_v52 }
  0x44   :  { %1180 = vmatprep.subr.bf16.mxu0 %v1284_v0 }
  0x45   :  { %1165 = vmatpush3.bf16.msra.mxu1 %v1274_v63 }
  0x46   :  { %1206 = vmatprep.subr.bf16.mxu1 %v1284_v0 }
  0x47   :  { %1181 = vmatpush3.bf16.msra.mxu0 %v1263_v55 }
  0x48   :  { %1182 = vmatprep.subr.bf16.mxu0 %v1284_v0 }
  0x4a   :  { %1143 = vmatmul.mubr.bf16.gmra.mrb[16].mxu0 %v294_v48 }
  0x4b   :  { %1146 = vmatprep.mubr.msk.bf16.mxu0 %vm1285_vm0, %v1284_v0  ;;  %1183 = vmatpush3.bf16.msra.mxu0 %v1265_v56 }
  0x4c   :  { %1184 = vmatprep.subr.bf16.mxu0 %v1284_v0 }
  0x4f   :  { %1185 = vmatpush3.bf16.msra.mxu0 %v1267_v60 }
  0x50   :  { %1186 = vmatprep.subr.bf16.mxu0 %v1284_v0 }
  0x52   :  { %1147 = vmatmul.mubr.bf16.gmra.mrb[20].mxu0 %v295_v50 }
  0x53   :  { %1194 = vmatprep.mubr.msk.bf16.mxu0 %vm1285_vm0, %v1284_v0  ;;  %1187 = vmatpush3.bf16.msra.mxu0 %v1269_v62 }
  0x54   :  { %1188 = vmatprep.subr.bf16.mxu0 %v1284_v0 }
  0x57   :  { %1189 = vmatpush3.bf16.msra.mxu0 %v1271_v1  ;;  %v1278_v1 = vld [vmem:[%s1599_s2 + $0x90] sm:$0xff]  }
  0x58   :  { %1190 = vmatprep.subr.bf16.mxu0 %v1284_v0 }
  0x5b   :  { %1191 = vmatpush3.bf16.msra.mxu0 %v1273_v2 }
  0x5c   :  { %1192 = vmatprep.subr.bf16.mxu0 %v1284_v0 }
  0x5f   :  { %1193 = vmatpush3.bf16.msra.mxu0 %v1275_v3 }
  0xf5   :  { %v162_v4 = vpop.f32.mrb[0].mxu0  ;;  %v266_v5 = vpop.f32.mrb[0].mxu1 }
  0xf6   :  { %v1084_v6 = vpop.f32.mrb[1].mxu0  ;;  %v267_v7 = vadd.f32 %v266_v5, %v162_v4  ;;  %v1112_v8 = vpop.f32.mrb[1].mxu1 }
  0xf7   :  { %v165_v9 = vpop.f32.mrb[2].mxu0  ;;  %v269_v10 = vpop.f32.mrb[2].mxu1  ;;  %v1279_v8 = vld [vmem:[%s1599_s2 + $0x98] sm:$0xff]  }
  0xf8   :  { %v1085_v13 = vpop.f32.mrb[3].mxu0  ;;  %v270_v14 = vadd.f32 %v269_v10, %v165_v9  ;;  %v1113_v17 = vpop.f32.mrb[3].mxu1 }
  0xfd   :  { %v170_v18 = vpop.f32.mrb[4].mxu0  ;;  %v274_v20 = vpop.f32.mrb[4].mxu1 }
  0xfe   :  { %v1088_v19 = vpop.f32.mrb[5].mxu0  ;;  %v275_v21 = vadd.f32 %v274_v20, %v170_v18  ;;  %v1116_v23 = vpop.f32.mrb[5].mxu1  ;;  %v1280_v18 = vld [vmem:[%s1599_s2 + $0xa0] sm:$0xff]   ;;  %v1281_v20 = vld [vmem:[%s1599_s2 + $0xa8] sm:$0xff]  }
  0xff   :  { %v173_v22 = vpop.f32.mrb[6].mxu0  ;;  %v277_v25 = vpop.f32.mrb[6].mxu1 }
 0x100   :  { %v1089_v24 = vpop.f32.mrb[7].mxu0  ;;  %v278_v26 = vadd.f32 %v277_v25, %v173_v22  ;;  %v1117_v27 = vpop.f32.mrb[7].mxu1 }
 0x101   :  { %v1282_v24 = vld [vmem:[%s1599_s2 + $0xb0] sm:$0xff]  }
 0x105   :  { %v178_v28 = vpop.f32.mrb[8].mxu0  ;;  %v282_v30 = vpop.f32.mrb[8].mxu1 }
 0x106   :  { %v1092_v29 = vpop.f32.mrb[9].mxu0  ;;  %v283_v32 = vadd.f32 %v282_v30, %v178_v28  ;;  %v1120_v33 = vpop.f32.mrb[9].mxu1 }
 0x107   :  { %v181_v31 = vpop.f32.mrb[10].mxu0  ;;  %v285_v35 = vpop.f32.mrb[10].mxu1 }
 0x108   :  { %v1093_v34 = vpop.f32.mrb[11].mxu0  ;;  %v1121_v36 = vpop.f32.mrb[11].mxu1 }
 0x115   :  { %v395_v37 = vpop.f32.mrb[12].mxu0 }
 0x116   :  { %v417_v39 = vadd.f32 %v395_v37, %v267_v7  ;;  %v1140_v40 = vpop.f32.mrb[13].mxu0 }
 0x117   :  { %v398_v41 = vpop.f32.mrb[14].mxu0 }
 0x118   :  { %v427_v42 = vadd.f32 %v937_v38, %v417_v39  ;;  %v418_v43 = vadd.f32 %v398_v41, %v270_v14  ;;  %v1141_v44 = vpop.f32.mrb[15].mxu0 }
 0x11a   :  { %v432_v45 = vmax.f32 %v427_v42, 0.0  ;;  %v428_v46 = vadd.f32 %v937_v38, %v418_v43 }
 0x11c   :  { %437 = vst [vmem:[#allocation3 + $0x1] sm:$0xff] %v432_v45  ;;  %v433_v47 = vmax.f32 %v428_v46, 0.0 }
 0x11d   :  { %v403_v48 = vpop.f32.mrb[16].mxu0 }
 0x11e   :  { %438 = vst [vmem:[#allocation3 + $0x9] sm:$0xff] %v433_v47  ;;  %v419_v50 = vadd.f32 %v403_v48, %v275_v21  ;;  %v1144_v51 = vpop.f32.mrb[17].mxu0  ;;  %v474_v52 = vpack.c.bf16 %v433_v47, %v432_v45 }
 0x11f   :  { %v406_v53 = vpop.f32.mrb[18].mxu0 }
 0x120   :  { %v429_v54 = vadd.f32 %v937_v38, %v419_v50  ;;  %v420_v55 = vadd.f32 %v406_v53, %v278_v26  ;;  %v1145_v56 = vpop.f32.mrb[19].mxu0  ;;  %1167 = vmatmul.mubr.bf16.vlgmr.msra.gmra.mrb[12].mxu1 %v474_v52  ;;  %v1283_v26 = vld [vmem:[%s1599_s2 + $0xb8] sm:$0xff]  }
 0x121   :  { %1207 = vmatpush3.bf16.msra.mxu1 %v1276_v49  ;;  %1170 = vmatprep.mubr.msk.bf16.mxu1 %vm1285_vm0, %v1284_v0 }
 0x122   :  { %v434_v58 = vmax.f32 %v429_v54, 0.0  ;;  %v430_v59 = vadd.f32 %v937_v38, %v420_v55  ;;  %1208 = vmatprep.subr.bf16.mxu1 %v1284_v0 }
 0x123   :  { %v445_v62 = vld [vmem:[#allocation3] sm:$0xff] }
 0x124   :  { %439 = vst [vmem:[#allocation3 + $0x11] sm:$0xff] %v434_v58  ;;  %v435_v60 = vmax.f32 %v430_v59, 0.0 }
 0x125   :  { %444 = vst [vmem:[#allocation3 + $0x11] sm:$0x3] %v1284_v0  ;;  %v411_v61 = vpop.f32.mrb[20].mxu0  ;;  %v446_v63 = vld [vmem:[#allocation3 + $0x8] sm:$0xff]  ;;  %1209 = vmatpush3.bf16.msra.mxu1 %v1277_v57 }
 0x126   :  { %440 = vst [vmem:[#allocation3 + $0x19] sm:$0xff] %v435_v60  ;;  %v421_v2 = vadd.f32 %v411_v61, %v283_v32  ;;  %v450_v3 = vpack.c.bf16 %v446_v63, %v445_v62  ;;  %v1148_v4 = vpop.f32.mrb[21].mxu0  ;;  %1210 = vmatprep.subr.bf16.mxu1 %v1284_v0  ;;  %v702_v28 = vld [vmem:[#allocation3 + $0x2] sm:$0xff] }
 0x127   :  { %v414_v5 = vpop.f32.mrb[22].mxu0 }
 0x128   :  { %v431_v6 = vadd.f32 %v937_v38, %v421_v2  ;;  %1195 = vmatmul.mubr.bf16.vlgmr.msra.gmra.mrb[24].mxu0 %v450_v3  ;;  %v1149_v7 = vpop.f32.mrb[23].mxu0 }
 0x129   :  { %1198 = vmatprep.mubr.msk.bf16.mxu0 %vm1285_vm0, %v1284_v0  ;;  %1211 = vmatpush3.bf16.msra.mxu1 %v1278_v1  ;;  %v994_v1 = vld [vmem:[%s1600_s3 + $0x1] ss:$0 sm:$0xff] }
 0x12a   :  { %v436_v9 = vmax.f32 %v431_v6, 0.0  ;;  %1212 = vmatprep.subr.bf16.mxu1 %v1284_v0 }
 0x12c   :  { %441 = vst [vmem:[#allocation3 + $0x21] sm:$0x3] %v436_v9  ;;  %v471_v10 = vld [vmem:[#allocation3 + $0x11] sm:$0xff] }
 0x12d   :  { %v447_v13 = vld [vmem:[#allocation3 + $0x10] sm:$0xff]  ;;  %v475_v14 = vpack.c.bf16 %v435_v60, %v471_v10  ;;  %v448_v17 = vld [vmem:[#allocation3 + $0x18] sm:$0xff]  ;;  %1213 = vmatpush3.bf16.msra.mxu1 %v1279_v8 }
 0x12e   :  { %v451_v19 = vpack.c.bf16 %v448_v17, %v447_v13  ;;  %1214 = vmatprep.subr.bf16.mxu1 %v1284_v0  ;;  %v703_v27 = vld [vmem:[#allocation3 + $0xa] sm:$0xff]  ;;  %v704_v31 = vld [vmem:[#allocation3 + $0x12] sm:$0xff]  ;;  %v859_v17 = vrot.slane %v1383_v15, 6 }
 0x12f   :  { %1171 = vmatmul.mubr.bf16.gmra.mrb[16].mxu1 %v475_v14  ;;  %v707_v29 = vpack.c.bf16 %v703_v27, %v702_v28 }
 0x130   :  { %1199 = vmatmul.mubr.bf16.gmra.mrb[28].mxu0 %v451_v19  ;;  %1174 = vmatprep.mubr.msk.bf16.mxu1 %vm1285_vm0, %v1284_v0 }
 0x131   :  { %1202 = vmatprep.mubr.msk.bf16.mxu0 %vm1285_vm0, %v1284_v0  ;;  %1215 = vmatpush3.bf16.msra.mxu1 %v1280_v18  ;;  %v860_v18 = vrot.slane %v1389_v16, 6 }
 0x132   :  { %1216 = vmatprep.subr.bf16.mxu1 %v1284_v0 }
 0x133   :  { %v473_v21 = vld [vmem:[#allocation3 + $0x21] sm:$0x3] }
 0x134   :  { %v449_v22 = vld [vmem:[#allocation3 + $0x20] sm:$0x3]  ;;  %v476_v23 = vpack.c.bf16 %v473_v21, %v473_v21  ;;  %v706_v33 = vld [vmem:[#allocation3 + $0x22] sm:$0x3] }
 0x135   :  { %1217 = vmatpush3.bf16.msra.mxu1 %v1281_v20  ;;  %v452_v25 = vpack.c.bf16 %v449_v22, %v449_v22  ;;  %v705_v30 = vld [vmem:[#allocation3 + $0x1a] sm:$0xff]  ;;  %v709_v34 = vpack.c.bf16 %v706_v33, %v706_v33 }
 0x136   :  { %1218 = vmatprep.subr.bf16.mxu1 %v1284_v0  ;;  %v708_v32 = vpack.c.bf16 %v705_v30, %v704_v31 }
 0x137   :  { %1175 = vmatmul.mubr.bf16.gmra.mrb[20].mxu1 %v476_v23 }
 0x138   :  { %1203 = vmatmul.mubr.bf16.gmra.mrb[32].mxu0 %v452_v25  ;;  %1222 = vmatprep.mubr.msk.bf16.mxu1 %vm1285_vm0, %v1284_v0 }
 0x139   :  { %1219 = vmatpush3.bf16.msra.mxu1 %v1282_v24  ;;  %v861_v24 = vsel %vm858_vm1, %v859_v17, %v860_v18 }
 0x13a   :  { %1220 = vmatprep.subr.bf16.mxu1 %v1284_v0 }
 0x13d   :  { %1221 = vmatpush3.bf16.msra.mxu1 %v1283_v26 }
 0x140   :  { %1223 = vmatmul.mubr.bf16.vlgmr.msra.gmra.mrb[24].mxu1 %v707_v29 }
 0x141   :  { %1226 = vmatprep.mubr.msk.bf16.mxu1 %vm1285_vm0, %v1284_v0 }
 0x148   :  { %1227 = vmatmul.mubr.bf16.gmra.mrb[28].mxu1 %v708_v32 }
 0x149   :  { %1230 = vmatprep.mubr.msk.bf16.mxu1 %vm1285_vm0, %v1284_v0 }
 0x150   :  { %1231 = vmatmul.mubr.bf16.gmra.mrb[32].mxu1 %v709_v34 }
 0x1f3   :  { %v576_v35 = vpop.f32.mrb[12].mxu1 }
 0x1f4   :  { %v1168_v36 = vpop.f32.mrb[13].mxu1 }
 0x1f5   :  { %v579_v37 = vpop.f32.mrb[14].mxu1 }
 0x1f6   :  { %v1169_v38 = vpop.f32.mrb[15].mxu1 }
 0x1fb   :  { %v680_v39 = vpop.f32.mrb[24].mxu0 }
 0x1fc   :  { %v681_v40 = vadd.f32 %v680_v39, %v576_v35  ;;  %v1196_v41 = vpop.f32.mrb[25].mxu0 }
 0x1fd   :  { %v683_v42 = vpop.f32.mrb[26].mxu0 }
 0x1fe   :  { %v684_v43 = vadd.f32 %v683_v42, %v579_v37  ;;  %v1197_v44 = vpop.f32.mrb[27].mxu0 }
 0x202   :  { %v584_v45 = vpop.f32.mrb[16].mxu1 }
 0x203   :  { %v688_v46 = vpop.f32.mrb[28].mxu0  ;;  %v1172_v47 = vpop.f32.mrb[17].mxu1 }
 0x204   :  { %v689_v48 = vadd.f32 %v688_v46, %v584_v45  ;;  %v1200_v49 = vpop.f32.mrb[29].mxu0  ;;  %v587_v50 = vpop.f32.mrb[18].mxu1 }
 0x205   :  { %v691_v0 = vpop.f32.mrb[30].mxu0  ;;  %v1173_v51 = vpop.f32.mrb[19].mxu1 }
 0x206   :  { %v692_v52 = vadd.f32 %v691_v0, %v587_v50  ;;  %v1201_v53 = vpop.f32.mrb[31].mxu0 }
 0x20a   :  { %v592_v54 = vpop.f32.mrb[20].mxu1 }
 0x20b   :  { %v696_v55 = vpop.f32.mrb[32].mxu0  ;;  %v1176_v56 = vpop.f32.mrb[21].mxu1 }
 0x20c   :  { %v697_v57 = vadd.f32 %v696_v55, %v592_v54  ;;  %v1204_v58 = vpop.f32.mrb[33].mxu0  ;;  %v595_v59 = vpop.f32.mrb[22].mxu1 }
 0x20d   :  { %v699_v60 = vpop.f32.mrb[34].mxu0  ;;  %v1177_v61 = vpop.f32.mrb[23].mxu1 }
 0x20e   :  { %v1205_v62 = vpop.f32.mrb[35].mxu0 }
 0x213   :  { %v809_v63 = vpop.f32.mrb[24].mxu1 }
 0x214   :  { %v831_v2 = vadd.f32 %v809_v63, %v681_v40  ;;  %v1224_v3 = vpop.f32.mrb[25].mxu1 }
 0x215   :  { %v812_v4 = vpop.f32.mrb[26].mxu1 }
 0x216   :  { %v841_v5 = vadd.f32 %v994_v1, %v831_v2  ;;  %v832_v6 = vadd.f32 %v812_v4, %v684_v43  ;;  %v1225_v7 = vpop.f32.mrb[27].mxu1 }
 0x218   :  { %v848_v8 = vadd.f32 %v841_v5, %v1364_v11  ;;  %v842_v9 = vadd.f32 %v994_v1, %v832_v6 }
 0x21a   :  { %v850_v10 = vmax.f32 %v848_v8, 0.0  ;;  %v849_v13 = vadd.f32 %v842_v9, %v1369_v12 }
 0x21b   :  { %v817_v14 = vpop.f32.mrb[28].mxu1 }
 0x21c   :  { %852 = vst [vmem:[%s1601_s4] sm:$0xff] %v850_v10  ;;  %v851_v19 = vmax.f32 %v849_v13, 0.0  ;;  %v833_v20 = vadd.f32 %v817_v14, %v689_v48  ;;  %v1228_v21 = vpop.f32.mrb[29].mxu1 }
 0x21d   :  { %v820_v22 = vpop.f32.mrb[30].mxu1 }
 0x21e   :  { %853 = vst [vmem:[%s1601_s4 + $0x8] sm:$0xff] %v851_v19  ;;  %v843_v11 = vadd.f32 %v994_v1, %v833_v20  ;;  %v834_v12 = vadd.f32 %v820_v22, %v692_v52  ;;  %v1229_v23 = vpop.f32.mrb[31].mxu1 }
 0x220   :  { %v865_v15 = vadd.f32 %v859_v17, %v843_v11  ;;  %v844_v25 = vadd.f32 %v994_v1, %v834_v12 }
 0x222   :  { %v868_v16 = vmax.f32 %v865_v15, 0.0  ;;  %v866_v26 = vadd.f32 %v861_v24, %v844_v25 }
 0x223   :  { %v825_v27 = vpop.f32.mrb[32].mxu1 }
 0x224   :  { %997 = vst [vmem:[%s1601_s4 + $0xe] sm:$0xfc] %v868_v16  ;;  %v869_v28 = vmax.f32 %v866_v26, 0.0  ;;  %v835_v29 = vadd.f32 %v825_v27, %v697_v57  ;;  %v1232_v30 = vpop.f32.mrb[33].mxu1 }
 0x225   :  { %v828_v31 = vpop.f32.mrb[34].mxu1 }
 0x226   :  { %998 = vst [vmem:[%s1601_s4 + $0x16] sm:$0xff] %v869_v28  ;;  %v845_v32 = vadd.f32 %v994_v1, %v835_v29  ;;  %v1233_v33 = vpop.f32.mrb[35].mxu1 }
 0x228   :  { %v867_v34 = vadd.f32 %v860_v18, %v845_v32 }
 0x22a   :  { %v870_v35 = vmax.f32 %v867_v34, 0.0 }
 0x22c   :  { %999 = vst [vmem:[%s1601_s4 + $0x1e] sm:$0x3] %v870_v35 }

</bundles_post_ra>
